<compile_context>
chip_gen: v7x
topology: tpu7x:2x2x1
jax: 0.10.0
libtpu: 0.0.40
codegen_flags: <defaults>
</compile_context>

<pallas_src>
import jax
import jax.numpy as jnp
from jax.experimental import pallas as pl
from jax.experimental.pallas import tpu as pltpu

LATENT_DIMS = 2
IN_FEATURES = 20   # flattened feature count expected by both linears
HIDDEN = 15        # linear1 width (unused by the returned value; see note above)

_DEFAULT_TB = 2048  # batch-tile rows (multiple of 8); 2 * TB*20*4B ~= 320 KiB VMEM


def _round_up(n, m):
    return (n + m - 1) // m * m


def encoder_kernel(x_ref, w2_ref, b2_ref, z_ref):
    # x_ref: (TB, 20) f32   w2_ref: (20, 2)   b2_ref: (1, 2)   z_ref: (TB, 2)
    # One MXU matmul + one VPU bias add per batch tile.
    z_ref[...] = (
        jnp.dot(x_ref[...], w2_ref[...], preferred_element_type=jnp.float32)
        + b2_ref[...]
    )


def encoder_forward(x, w1, b1, w2, b2, *, tile_b=_DEFAULT_TB):
    """Forward pass of `Encoder`.

    x: (B, ...) with prod(trailing dims) == 20.  Returns (B, LATENT_DIMS) f32.
    w1/b1 are accepted for parameter parity with the nn.Module, but under the
    shape-consistent interpretation the output does not depend on them.
    """
    del w1, b1  # dead branch removed (see module-level note)
    B = x.shape[0]
    x_flat = x.reshape(B, -1).astype(jnp.float32)        # torch.flatten(x, 1)
    assert x_flat.shape[1] == IN_FEATURES, x_flat.shape
    w2 = w2.astype(jnp.float32)                          # (in=20, out=2), pre-transposed
    b2 = b2.reshape(1, LATENT_DIMS).astype(jnp.float32)  # (1, 2)

    # Batch tiling: full-size tiles for large B, shrink (multiple of 8) for tiny B,
    # and zero-pad the batch up to a whole number of tiles.
    tb = min(tile_b, _round_up(B, 8))
    b_pad = _round_up(B, tb)
    if b_pad != B:
        x_flat = jnp.pad(x_flat, ((0, b_pad - B), (0, 0)))
    n_tiles = b_pad // tb

    cost = pl.CostEstimate(
        flops=2 * b_pad * IN_FEATURES * LATENT_DIMS,
        transcendentals=0,
        bytes_accessed=(b_pad * IN_FEATURES * 4            # x read
                        + b_pad * LATENT_DIMS * 4          # z write
                        + (IN_FEATURES + 1) * LATENT_DIMS * 4),  # weights
    )

    z = pl.pallas_call(
        encoder_kernel,
        grid=(n_tiles,),
        in_specs=[
            pl.BlockSpec((tb, IN_FEATURES), lambda i: (i, 0)),          # x tile
            pl.BlockSpec((IN_FEATURES, LATENT_DIMS), lambda i: (0, 0)),  # W2 (resident)
            pl.BlockSpec((1, LATENT_DIMS), lambda i: (0, 0)),            # b2 (resident)
        ],
        out_specs=pl.BlockSpec((tb, LATENT_DIMS), lambda i: (i, 0)),
        out_shape=jax.ShapeDtypeStruct((b_pad, LATENT_DIMS), jnp.float32),
        compiler_params=pltpu.CompilerParams(
            dimension_semantics=("parallel",),   # megacore sharding on v7x
        ),
        cost_estimate=cost,
    )(x_flat, w2, b2)

    return z[:B] if b_pad != B else z


def init_params(key):
    """Deterministic init mirroring nn.Linear default: U(-1/sqrt(fan_in), +)."""
    k1, k2, k3, k4 = jax.random.split(key, 4)
    bound = 1.0 / jnp.sqrt(jnp.float32(IN_FEATURES))
    # stored transposed relative to PyTorch: (in_features, out_features)
    w1 = jax.random.uniform(k1, (IN_FEATURES, HIDDEN), jnp.float32, -bound, bound)
    b1 = jax.random.uniform(k2, (1, HIDDEN), jnp.float32, -bound, bound)
    w2 = jax.random.uniform(k3, (IN_FEATURES, LATENT_DIMS), jnp.float32, -bound, bound)
    b2 = jax.random.uniform(k4, (1, LATENT_DIMS), jnp.float32, -bound, bound)
    return w1, b1, w2, b2


if __name__ == "__main__":
    key = jax.random.PRNGKey(0)
    k_x1, k_x2, k_p = jax.random.split(key, 3)
    w1, b1, w2, b2 = init_params(k_p)

    ok = True
    # Two small cases: trailing dims flatten to 20 features (4x5 "image").
    # B=10 additionally exercises the batch-padding path (pads to 16 rows).
    for k_x, B in ((k_x1, 8), (k_x2, 10)):
        x = jax.random.normal(k_x, (B, 4, 5), jnp.float32)
        z = encoder_forward(x, w1, b1, w2, b2)
        z = jax.block_until_ready(z)

        # Pure-JAX reference (same shape-consistent interpretation).
        z_ref = x.reshape(B, -1) @ w2 + b2
        ok &= (z.shape == (B, LATENT_DIMS))
        ok &= bool(jnp.allclose(z, z_ref, atol=1e-5, rtol=1e-5))

    assert ok
    print("KERNEL_OK")
</pallas_src>

<mosaic_0001>
module attributes {stable_mosaic.version = 11 : i64} {
  func.func @encoder_kernel(%arg0: i32, %arg1: memref<8x20xf32, #tpu.memory_space<vmem>>, %arg2: memref<20x2xf32, #tpu.memory_space<vmem>>, %arg3: memref<1x2xf32, #tpu.memory_space<vmem>>, %arg4: memref<8x2xf32, #tpu.memory_space<vmem>>) attributes {dimension_semantics = [#tpu.dimension_semantics<parallel>], iteration_bounds = array<i64: 1>, scalar_prefetch = 0 : i64, scratch_operands = 0 : i64, tpu.core_type = #tpu.core_type<tc>, window_params = [{transform_indices = @transform_0, window_bounds = array<i64: 8, 20>}, {pipeline_mode = #tpu.pipeline_mode<synchronous>, transform_indices = @transform_1, window_bounds = array<i64: 20, 2>}, {pipeline_mode = #tpu.pipeline_mode<synchronous>, transform_indices = @transform_2, window_bounds = array<i64: 1, 2>}, {transform_indices = @transform_3, window_bounds = array<i64: 8, 2>}]} {
    %c0 = arith.constant 0 : index
    %c0_0 = arith.constant 0 : index
    %0 = vector.load %arg1[%c0, %c0_0] : memref<8x20xf32, #tpu.memory_space<vmem>>, vector<8x20xf32>
    %c0_1 = arith.constant 0 : index
    %c0_2 = arith.constant 0 : index
    %1 = vector.load %arg2[%c0_1, %c0_2] : memref<20x2xf32, #tpu.memory_space<vmem>>, vector<20x2xf32>
    %cst = arith.constant dense<0.000000e+00> : vector<8x2xf32>
    %2 = tpu.matmul %0, %1, %cst {dimension_numbers = #tpu.dot_dimension_numbers<[1], [0], [0], [1], [0, 0, 1, 1], [], []>} : vector<8x20xf32>, vector<20x2xf32>, vector<8x2xf32> -> vector<8x2xf32>
    %c0_3 = arith.constant 0 : index
    %c0_4 = arith.constant 0 : index
    %3 = vector.load %arg3[%c0_3, %c0_4] : memref<1x2xf32, #tpu.memory_space<vmem>>, vector<1x2xf32>
    %4 = vector.broadcast %3 : vector<1x2xf32> to vector<8x2xf32>
    %5 = arith.addf %2, %4 : vector<8x2xf32>
    %c0_5 = arith.constant 0 : index
    %c0_6 = arith.constant 0 : index
    %6 = vector.load %arg4[%c0_5, %c0_6] : memref<8x2xf32, #tpu.memory_space<vmem>>, vector<8x2xf32>
    tpu.vector_store %arg4[%c0_5, %c0_6], %5 {strides = array<i32>} : memref<8x2xf32, #tpu.memory_space<vmem>>, vector<8x2xf32>,
    return
  }
  func.func @transform_0(%arg0: i32) -> (i32, i32) {
    %c0_i32 = arith.constant 0 : i32
    %c0_i32_0 = arith.constant 0 : i32
    return %arg0, %c0_i32 : i32, i32
  }
  func.func @transform_1(%arg0: i32) -> (i32, i32) {
    %c0_i32 = arith.constant 0 : i32
    %c0_i32_0 = arith.constant 0 : i32
    %c0_i32_1 = arith.constant 0 : i32
    return %c0_i32, %c0_i32_0 : i32, i32
  }
  func.func @transform_2(%arg0: i32) -> (i32, i32) {
    %c0_i32 = arith.constant 0 : i32
    %c0_i32_0 = arith.constant 0 : i32
    %c0_i32_1 = arith.constant 0 : i32
    return %c0_i32, %c0_i32_0 : i32, i32
  }
  func.func @transform_3(%arg0: i32) -> (i32, i32) {
    %c0_i32 = arith.constant 0 : i32
    %c0_i32_0 = arith.constant 0 : i32
    return %arg0, %c0_i32 : i32, i32
  }
}

</mosaic_0001>

<bundles_post_ra>
// kernel: tpu_custom_call.1
= control target key start
LH: loop header
LB: loop body
LE: loop exit
PB: predicated region body
PF: predicated region fallthrough
CT: control target
= control target key end

     0   :  { %v131_v0 = vmov 0.0|0.0   ;;  %vm132_vm0 = vmmov 0   ;;  %v133_v3 = vmov 0.0   ;;  %vm29_vm1 = vcmask 1043456   ;;  %s172_s1 = inlined_call_operand.vmem [shape: f32[20,2], index: 1, kind: input, shape index: {}]   ;;  %s173_s0 = inlined_call_operand.vmem [shape: f32[8,20], index: 0, kind: input, shape index: {}]   ;;  %s174_s2 = inlined_call_operand.vmem [shape: f32[1,2], index: 2, kind: input, shape index: {}]   ;;  %s175_s3 = inlined_call_operand.vmem [shape: f32[8,2], index: 3, kind: output, shape index: {}]  }
   0x1   :  { %125 = vmatprep.subr.bf16.mxu0 %v131_v0  ;;  %v15_v1 = vld [vmem:[%s172_s1] sm:$0xff]  ;;  %v16_v2 = vld [vmem:[%s172_s1 + $0x8] sm:$0xff]  ;;  %122 = vmatprep.mubr.msk.f32.mxu0 %vm132_vm0, %v133_v3  ;;  %v17_v5 = vld [vmem:[%s172_s1 + $0x10] sm:$0xf]  ;;  %vm25_vm2 = vcmask 162816   ;;  %vm103_vm3 = vcmask 15360  }
   0x2   :  { %v126_v4 = vpack.c.bf16 %v16_v2, %v15_v1  ;;  %v14_v6 = vld [vmem:[%s173_s0] sm:$0xff] }
   0x3   :  { %v109_v7 = vld [vmem:[%s174_s2] ss:$0 sm:$0xff] }
   0x4   :  { %127 = vmatpush3.bf16.msra.mxu0 %v126_v4 }
   0x5   :  { %120 = vmatprep.subr.mxu0 %v133_v3 }
   0x8   :  { %121 = vmatpush3.msk.msra.mxu0 %vm29_vm1, %v17_v5 }
   0x9   :  { %123 = vmatmul.mubr.msk.f32.vlgmr.msra.gmra.mrb[0].mxu0 %vm25_vm2, %v14_v6 }
  0xdc   :  { %v99_v8 = vpop.f32.mrb[0].mxu0 }
  0xdd   :  { %v100_v9 = vadd.f32 %v109_v7, %v99_v8  ;;  %v124_v10 = vpop.f32.mrb[1].mxu0 }
  0xdf   :  { %104 = vst.msk [vmem:[%s175_s3] sm:$0xff] %vm103_vm3, %v100_v9 }

</bundles_post_ra>
